<compile_context>
chip_gen: v7x
topology: tpu7x:2x2x1
jax: 0.10.0
libtpu: 0.0.40
codegen_flags: <defaults>
</compile_context>

<pallas_src>
import jax
import jax.numpy as jnp
from jax import lax
from jax.experimental import pallas as pl
from jax.experimental.pallas import tpu as pltpu


LANE = 128           # TPU lane width: pad D / H / C (and vocab tiles) to this
NEG_INF_BIAS = -1e30  # bias for padded classes -> exp() == 0 in the LSE


def _round_up(x, m):
    return (x + m - 1) // m * m


def dan_kernel(tok_ref, emb_ref, w1_ref, b1_ref, w2_ref, b2_ref, out_ref, acc_ref):
    """One (batch-tile, vocab-tile) grid step.

    tok_ref : (TB, L, 1) int32   token ids for this batch tile
    emb_ref : (TV, Dp)   bf16    vocab tile of the embedding table
    w1_ref  : (Dp, Hp)   bf16    fc1 weight, already (in, out)
    b1_ref  : (1, Hp)    f32
    w2_ref  : (Hp, Cp)   bf16    fc2 weight, already (in, out)
    b2_ref  : (1, Cp)    f32     padded classes carry -1e30 bias
    out_ref : (TB, Cp)   f32     log-softmax output tile
    acc_ref : (TB, Dp)   f32     VMEM scratch: running sum of embeddings
    """
    v = pl.program_id(1)
    tb, seq_len, _ = tok_ref.shape
    tv = emb_ref.shape[0]

    @pl.when(v == 0)
    def _init():
        acc_ref[...] = jnp.zeros_like(acc_ref)

    # Bag-of-words counts for this vocab tile:
    #   counts[b, j] = #{l : tok[b, l] == v*TV + j}
    # TODO(synk): for very large L*TV tiles this one-hot intermediate should be
    # chunked over L (or built from SMEM-prefetched tokens) to bound vreg use.
    tok = tok_ref[...]                                                    # (TB, L, 1)
    vocab_ids = v * tv + lax.broadcasted_iota(jnp.int32, (tb, seq_len, tv), 2)
    onehot = (tok == vocab_ids).astype(jnp.float32)                       # (TB, L, TV)
    counts = jnp.sum(onehot, axis=1)                                      # (TB, TV)

    # Accumulate sum_l emb[token[b, l]] across vocab tiles on the MXU (f32 acc).
    acc_ref[...] += jnp.dot(counts.astype(jnp.bfloat16), emb_ref[...],
                            preferred_element_type=jnp.float32)

    @pl.when(v == pl.num_programs(1) - 1)
    def _finalize():
        inv_l = jnp.float32(1.0 / seq_len)
        avg = (acc_ref[...] * inv_l).astype(jnp.bfloat16)                 # (TB, Dp)

        # fc1 + ReLU
        h = jnp.dot(avg, w1_ref[...], preferred_element_type=jnp.float32) + b1_ref[...]
        h = jnp.maximum(h, 0.0).astype(jnp.bfloat16)                      # (TB, Hp)

        # fc2 (padded classes: 0-weight columns + -1e30 bias)
        logits = jnp.dot(h, w2_ref[...], preferred_element_type=jnp.float32) + b2_ref[...]

        # log_softmax over the class (lane) axis — max/sum on XLU, exp/log on EUP.
        m = jnp.max(logits, axis=-1, keepdims=True)
        shifted = logits - m
        lse = jnp.log(jnp.sum(jnp.exp(shifted), axis=-1, keepdims=True))
        out_ref[...] = shifted - lse                                      # (TB, Cp)


def prepare_dan_params(emb_table, w1, b1, w2, b2, *, vocab_tile=LANE):
    """One-time transpose / pad / cast of model parameters (not per call)."""
    V, D = emb_table.shape
    H = w1.shape[0]
    C = w2.shape[0]

    Vp = _round_up(V, vocab_tile)
    Dp = _round_up(D, LANE)
    Hp = _round_up(H, LANE)
    Cp = _round_up(C, LANE)

    emb_p = jnp.zeros((Vp, Dp), jnp.bfloat16).at[:V, :D].set(emb_table.astype(jnp.bfloat16))
    w1_p = jnp.zeros((Dp, Hp), jnp.bfloat16).at[:D, :H].set(w1.T.astype(jnp.bfloat16))
    b1_p = jnp.zeros((1, Hp), jnp.float32).at[:, :H].set(b1.astype(jnp.float32))
    w2_p = jnp.zeros((Hp, Cp), jnp.bfloat16).at[:H, :C].set(w2.T.astype(jnp.bfloat16))
    b2_p = jnp.full((1, Cp), NEG_INF_BIAS, jnp.float32).at[:, :C].set(b2.astype(jnp.float32))

    return dict(emb=emb_p, w1=w1_p, b1=b1_p, w2=w2_p, b2=b2_p,
                dims=dict(V=V, D=D, H=H, C=C, Vp=Vp, Dp=Dp, Hp=Hp, Cp=Cp),
                vocab_tile=vocab_tile)


def dan_forward(tokens, params, *, batch_tile=8):
    """tokens: (B, L) int32 -> (B, C) f32 log-probabilities."""
    d = params["dims"]
    TV = params["vocab_tile"]
    TB = batch_tile

    B, L = tokens.shape
    Bp = _round_up(B, TB)

    # Pad the batch with token-id-0 rows (sliced off below) and add a trailing
    # singleton lane axis so each token scalar broadcasts across lanes in-kernel.
    tok_p = jnp.zeros((Bp, L, 1), jnp.int32).at[:B, :, 0].set(tokens.astype(jnp.int32))

    n_b = Bp // TB
    n_v = d["Vp"] // TV

    # VMEM budget per step (double-buffered): tokens TB*L*4 + emb TV*Dp*2 bytes
    # + resident weights — tiny vs. the 32 MiB scoped default on v5e/v6e/v7x.
    grid_spec = pltpu.PrefetchScalarGridSpec(
        num_scalar_prefetch=0,
        grid=(n_b, n_v),                                            # vocab reduction last
        in_specs=[
            pl.BlockSpec((TB, L, 1), lambda i, v: (i, 0, 0)),       # tokens (batch-tiled)
            pl.BlockSpec((TV, d["Dp"]), lambda i, v: (v, 0)),       # emb table (vocab-tiled)
            pl.BlockSpec((d["Dp"], d["Hp"]), lambda i, v: (0, 0)),  # w1 (resident)
            pl.BlockSpec((1, d["Hp"]), lambda i, v: (0, 0)),        # b1
            pl.BlockSpec((d["Hp"], d["Cp"]), lambda i, v: (0, 0)),  # w2 (resident)
            pl.BlockSpec((1, d["Cp"]), lambda i, v: (0, 0)),        # b2
        ],
        out_specs=pl.BlockSpec((TB, d["Cp"]), lambda i, v: (i, 0)),
        scratch_shapes=[pltpu.VMEM((TB, d["Dp"]), jnp.float32)],
    )

    out_padded = pl.pallas_call(
        dan_kernel,
        out_shape=jax.ShapeDtypeStruct((Bp, d["Cp"]), jnp.float32),
        grid_spec=grid_spec,
        compiler_params=pltpu.CompilerParams(
            dimension_semantics=("parallel", "arbitrary"),          # batch across TCs on v7x
        ),
    )(tok_p, params["emb"], params["w1"], params["b1"], params["w2"], params["b2"])

    return out_padded[:B, :d["C"]]


def dan_reference(tokens, emb_table, w1, b1, w2, b2):
    """Pure-JAX f32 reference replicating the PyTorch forward."""
    embeds = jnp.take(emb_table, tokens, axis=0)
    avg = jnp.mean(embeds, axis=1)
    h = jnp.maximum(avg @ w1.T + b1, 0.0)
    logits = h @ w2.T + b2
    return jax.nn.log_softmax(logits, axis=1)


if __name__ == "__main__":
    # Small shapes consistent with the module's forward.
    B, L = 10, 16        # batch, sequence length
    V, D = 300, 32       # vocab size, embedding dim
    H, C = 32, 4         # hidden size, num classes

    key = jax.random.PRNGKey(0)
    k_emb, k_w1, k_b1, k_w2, k_b2, k_tok = jax.random.split(key, 6)

    emb_table = jax.random.normal(k_emb, (V, D), dtype=jnp.float32) * 0.1
    w1 = jax.random.normal(k_w1, (H, D), dtype=jnp.float32) * 0.1   # PyTorch (out, in)
    b1 = jax.random.normal(k_b1, (H,), dtype=jnp.float32) * 0.1
    w2 = jax.random.normal(k_w2, (C, H), dtype=jnp.float32) * 0.1   # PyTorch (out, in)
    b2 = jax.random.normal(k_b2, (C,), dtype=jnp.float32) * 0.1

    tokens = jax.random.randint(k_tok, (B, L), 0, V, dtype=jnp.int32)

    params = prepare_dan_params(emb_table, w1, b1, w2, b2)
    out = dan_forward(tokens, params)
    out = jax.block_until_ready(out)

    ref = dan_reference(tokens, emb_table, w1, b1, w2, b2)
    assert out.shape == (B, C), out.shape
    assert bool(jnp.all(jnp.isfinite(out)))
    # bf16 embedding/weight operands -> compare against the f32 reference with a
    # bf16-appropriate tolerance.
    max_err = float(jnp.max(jnp.abs(out - ref)))
    assert max_err < 2e-2, (max_err, out, ref)

    print("KERNEL_OK")
</pallas_src>

<mosaic_0001>
module attributes {stable_mosaic.version = 11 : i64} {
  func.func @dan_kernel(%arg0: i32, %arg1: i32, %arg2: memref<8x16x1xi32, #tpu.memory_space<vmem>>, %arg3: memref<128x128xbf16, #tpu.memory_space<vmem>>, %arg4: memref<128x128xbf16, #tpu.memory_space<vmem>>, %arg5: memref<1x128xf32, #tpu.memory_space<vmem>>, %arg6: memref<128x128xbf16, #tpu.memory_space<vmem>>, %arg7: memref<1x128xf32, #tpu.memory_space<vmem>>, %arg8: memref<8x128xf32, #tpu.memory_space<vmem>>, %arg9: memref<8x128xf32, #tpu.memory_space<vmem>>) attributes {dimension_semantics = [#tpu.dimension_semantics<parallel>, #tpu.dimension_semantics<arbitrary>], iteration_bounds = array<i64: 2, 3>, scalar_prefetch = 0 : i64, scratch_operands = 1 : i64, tpu.core_type = #tpu.core_type<tc>, window_params = [{transform_indices = @transform_0, window_bounds = array<i64: 8, 16, 1>}, {transform_indices = @transform_1, window_bounds = array<i64: 128, 128>}, {pipeline_mode = #tpu.pipeline_mode<synchronous>, transform_indices = @transform_2, window_bounds = array<i64: 128, 128>}, {pipeline_mode = #tpu.pipeline_mode<synchronous>, transform_indices = @transform_3, window_bounds = array<i64: 1, 128>}, {pipeline_mode = #tpu.pipeline_mode<synchronous>, transform_indices = @transform_4, window_bounds = array<i64: 128, 128>}, {pipeline_mode = #tpu.pipeline_mode<synchronous>, transform_indices = @transform_5, window_bounds = array<i64: 1, 128>}, {transform_indices = @transform_6, window_bounds = array<i64: 8, 128>}]} {
    %c0_i32 = arith.constant 0 : i32
    %0 = arith.cmpi eq, %arg1, %c0_i32 : i32
    %1 = arith.extui %0 : i1 to i32
    %c0_i32_0 = arith.constant 0 : i32
    %2 = arith.cmpi ne, %1, %c0_i32_0 : i32
    scf.if %2 {
      %cst_11 = arith.constant 0.000000e+00 : f32
      %22 = vector.broadcast %cst_11 : f32 to vector<8x128xf32>
      %c0_12 = arith.constant 0 : index
      %c0_13 = arith.constant 0 : index
      %23 = vector.load %arg9[%c0_12, %c0_13] : memref<8x128xf32, #tpu.memory_space<vmem>>, vector<8x128xf32>
      tpu.vector_store %arg9[%c0_12, %c0_13], %22 {strides = array<i32>} : memref<8x128xf32, #tpu.memory_space<vmem>>, vector<8x128xf32>,
    } else {
    }
    %c0 = arith.constant 0 : index
    %c0_1 = arith.constant 0 : index
    %c0_2 = arith.constant 0 : index
    %3 = vector.load %arg2[%c0, %c0_1, %c0_2] : memref<8x16x1xi32, #tpu.memory_space<vmem>>, vector<8x16x1xi32>
    %c128_i32 = arith.constant 128 : i32
    %4 = arith.muli %arg1, %c128_i32 : i32
    %5 = tpu.iota {dimensions = array<i32: 2>} : vector<8x16x128xi32>
    %6 = vector.broadcast %4 : i32 to vector<8x16x128xi32>
    %7 = arith.addi %6, %5 : vector<8x16x128xi32>
    %8 = vector.broadcast %3 : vector<8x16x1xi32> to vector<8x16x128xi32>
    %9 = arith.cmpi eq, %8, %7 : vector<8x16x128xi32>
    %10 = arith.extui %9 : vector<8x16x128xi1> to vector<8x16x128xi32>
    %11 = arith.sitofp %10 : vector<8x16x128xi32> to vector<8x16x128xf32>
    %cst = arith.constant dense<0.000000e+00> : vector<8x128xf32>
    %12 = vector.multi_reduction <add>, %11, %cst [1] : vector<8x16x128xf32> to vector<8x128xf32>
    %c0_3 = arith.constant 0 : index
    %c0_4 = arith.constant 0 : index
    %13 = vector.load %arg9[%c0_3, %c0_4] : memref<8x128xf32, #tpu.memory_space<vmem>>, vector<8x128xf32>
    %14 = arith.truncf %12 : vector<8x128xf32> to vector<8x128xbf16>
    %c0_5 = arith.constant 0 : index
    %c0_6 = arith.constant 0 : index
    %15 = vector.load %arg3[%c0_5, %c0_6] : memref<128x128xbf16, #tpu.memory_space<vmem>>, vector<128x128xbf16>
    %cst_7 = arith.constant dense<0.000000e+00> : vector<8x128xf32>
    %16 = tpu.matmul %14, %15, %cst_7 {dimension_numbers = #tpu.dot_dimension_numbers<[1], [0], [0], [1], [0, 0, 1, 1], [], []>} : vector<8x128xbf16>, vector<128x128xbf16>, vector<8x128xf32> -> vector<8x128xf32>
    %17 = arith.addf %13, %16 : vector<8x128xf32>
    %c0_8 = arith.constant 0 : index
    %c0_9 = arith.constant 0 : index
    %18 = vector.load %arg9[%c0_8, %c0_9] : memref<8x128xf32, #tpu.memory_space<vmem>>, vector<8x128xf32>
    tpu.vector_store %arg9[%c0_8, %c0_9], %17 {strides = array<i32>} : memref<8x128xf32, #tpu.memory_space<vmem>>, vector<8x128xf32>,
    %c2_i32 = arith.constant 2 : i32
    %19 = arith.cmpi eq, %arg1, %c2_i32 : i32
    %20 = arith.extui %19 : i1 to i32
    %c0_i32_10 = arith.constant 0 : i32
    %21 = arith.cmpi ne, %20, %c0_i32_10 : i32
    scf.if %21 {
      %c0_11 = arith.constant 0 : index
      %c0_12 = arith.constant 0 : index
      %22 = vector.load %arg9[%c0_11, %c0_12] : memref<8x128xf32, #tpu.memory_space<vmem>>, vector<8x128xf32>
      %cst_13 = arith.constant 6.250000e-02 : f32
      %23 = vector.broadcast %cst_13 : f32 to vector<8x128xf32>
      %24 = arith.mulf %22, %23 : vector<8x128xf32>
      %25 = arith.truncf %24 : vector<8x128xf32> to vector<8x128xbf16>
      %c0_14 = arith.constant 0 : index
      %c0_15 = arith.constant 0 : index
      %26 = vector.load %arg4[%c0_14, %c0_15] : memref<128x128xbf16, #tpu.memory_space<vmem>>, vector<128x128xbf16>
      %cst_16 = arith.constant dense<0.000000e+00> : vector<8x128xf32>
      %27 = tpu.matmul %25, %26, %cst_16 {dimension_numbers = #tpu.dot_dimension_numbers<[1], [0], [0], [1], [0, 0, 1, 1], [], []>} : vector<8x128xbf16>, vector<128x128xbf16>, vector<8x128xf32> -> vector<8x128xf32>
      %c0_17 = arith.constant 0 : index
      %c0_18 = arith.constant 0 : index
      %28 = vector.load %arg5[%c0_17, %c0_18] : memref<1x128xf32, #tpu.memory_space<vmem>>, vector<1x128xf32>
      %29 = vector.broadcast %28 : vector<1x128xf32> to vector<8x128xf32>
      %30 = arith.addf %27, %29 : vector<8x128xf32>
      %cst_19 = arith.constant 0.000000e+00 : f32
      %31 = vector.broadcast %cst_19 : f32 to vector<8x128xf32>
      %32 = arith.maximumf %30, %31 : vector<8x128xf32>
      %33 = arith.truncf %32 : vector<8x128xf32> to vector<8x128xbf16>
      %c0_20 = arith.constant 0 : index
      %c0_21 = arith.constant 0 : index
      %34 = vector.load %arg6[%c0_20, %c0_21] : memref<128x128xbf16, #tpu.memory_space<vmem>>, vector<128x128xbf16>
      %cst_22 = arith.constant dense<0.000000e+00> : vector<8x128xf32>
      %35 = tpu.matmul %33, %34, %cst_22 {dimension_numbers = #tpu.dot_dimension_numbers<[1], [0], [0], [1], [0, 0, 1, 1], [], []>} : vector<8x128xbf16>, vector<128x128xbf16>, vector<8x128xf32> -> vector<8x128xf32>
      %c0_23 = arith.constant 0 : index
      %c0_24 = arith.constant 0 : index
      %36 = vector.load %arg7[%c0_23, %c0_24] : memref<1x128xf32, #tpu.memory_space<vmem>>, vector<1x128xf32>
      %37 = vector.broadcast %36 : vector<1x128xf32> to vector<8x128xf32>
      %38 = arith.addf %35, %37 : vector<8x128xf32>
      %cst_25 = arith.constant dense<0xFF800000> : vector<8xf32>
      %39 = vector.multi_reduction <maximumf>, %38, %cst_25 [1] : vector<8x128xf32> to vector<8xf32>
      %40 = vector.shape_cast %39 : vector<8xf32> to vector<8x1xf32>
      %41 = vector.broadcast %40 : vector<8x1xf32> to vector<8x128xf32>
      %42 = arith.subf %38, %41 : vector<8x128xf32>
      %43 = math.exp %42 : vector<8x128xf32>
      %cst_26 = arith.constant dense<0.000000e+00> : vector<8xf32>
      %44 = vector.multi_reduction <add>, %43, %cst_26 [1] : vector<8x128xf32> to vector<8xf32>
      %45 = vector.shape_cast %44 : vector<8xf32> to vector<8x1xf32>
      %46 = math.log %45 : vector<8x1xf32>
      %47 = vector.broadcast %46 : vector<8x1xf32> to vector<8x128xf32>
      %48 = arith.subf %42, %47 : vector<8x128xf32>
      %c0_27 = arith.constant 0 : index
      %c0_28 = arith.constant 0 : index
      %49 = vector.load %arg8[%c0_27, %c0_28] : memref<8x128xf32, #tpu.memory_space<vmem>>, vector<8x128xf32>
      tpu.vector_store %arg8[%c0_27, %c0_28], %48 {strides = array<i32>} : memref<8x128xf32, #tpu.memory_space<vmem>>, vector<8x128xf32>,
    } else {
    }
    return
  }
  func.func @transform_0(%arg0: i32, %arg1: i32) -> (i32, i32, i32) {
    %c0_i32 = arith.constant 0 : i32
    %c0_i32_0 = arith.constant 0 : i32
    %c0_i32_1 = arith.constant 0 : i32
    return %arg0, %c0_i32, %c0_i32_0 : i32, i32, i32
  }
  func.func @transform_1(%arg0: i32, %arg1: i32) -> (i32, i32) {
    %c0_i32 = arith.constant 0 : i32
    %c0_i32_0 = arith.constant 0 : i32
    return %arg1, %c0_i32 : i32, i32
  }
  func.func @transform_2(%arg0: i32, %arg1: i32) -> (i32, i32) {
    %c0_i32 = arith.constant 0 : i32
    %c0_i32_0 = arith.constant 0 : i32
    %c0_i32_1 = arith.constant 0 : i32
    return %c0_i32, %c0_i32_0 : i32, i32
  }
  func.func @transform_3(%arg0: i32, %arg1: i32) -> (i32, i32) {
    %c0_i32 = arith.constant 0 : i32
    %c0_i32_0 = arith.constant 0 : i32
    %c0_i32_1 = arith.constant 0 : i32
    return %c0_i32, %c0_i32_0 : i32, i32
  }
  func.func @transform_4(%arg0: i32, %arg1: i32) -> (i32, i32) {
    %c0_i32 = arith.constant 0 : i32
    %c0_i32_0 = arith.constant 0 : i32
    %c0_i32_1 = arith.constant 0 : i32
    return %c0_i32, %c0_i32_0 : i32, i32
  }
  func.func @transform_5(%arg0: i32, %arg1: i32) -> (i32, i32) {
    %c0_i32 = arith.constant 0 : i32
    %c0_i32_0 = arith.constant 0 : i32
    %c0_i32_1 = arith.constant 0 : i32
    return %c0_i32, %c0_i32_0 : i32, i32
  }
  func.func @transform_6(%arg0: i32, %arg1: i32) -> (i32, i32) {
    %c0_i32 = arith.constant 0 : i32
    %c0_i32_0 = arith.constant 0 : i32
    return %arg0, %c0_i32 : i32, i32
  }
}

</mosaic_0001>

<bundles_post_ra>
// kernel: tpu_custom_call.1
= control target key start
LH: loop header
LB: loop body
LE: loop exit
PB: predicated region body
PF: predicated region fallthrough
CT: control target
= control target key end

     0   :  { %11 = vsyncpa [#allocation4], 0  ;;  %s1705_s0 = inlined_call_operand.vmem [shape: s32[16,16,1], index: 0, kind: input, shape index: {}]   ;;  %s1706_s1 = inlined_call_operand.vmem [shape: bf16[384,128], index: 1, kind: input, shape index: {}]   ;;  %s1707_s2 = inlined_call_operand.vmem [shape: bf16[128,128], index: 2, kind: input, shape index: {}]   ;;  %s1708_s3 = inlined_call_operand.vmem [shape: f32[1,128], index: 3, kind: input, shape index: {}]   ;;  %s1709_s4 = inlined_call_operand.hbm [shape: bf16[128,128], index: 4, kind: input, shape index: {}]   ;;  %s1710_s5 = inlined_call_operand.vmem [shape: f32[1,128], index: 5, kind: input, shape index: {}]   ;;  %s1711_s6 = inlined_call_operand.hbm [shape: f32[16,128], index: 6, kind: output, shape index: {}]  }
   0x1   :  { %12 = vsyncpa [#allocation5], 0 }
   0x2   :  { %14 = vsyncpa [#allocation5 + $0x1], 0  ;;  %s1423_s21 = smov 0   ;;  %s1425_s22 = smov 0  }
   0x3   :  { %s1427_s23 = smov 0   ;;  %s1429_s24 = smov 0  }
   0x4   :  { %s1431_s25 = smov 0   ;;  %s1433_s26 = smov 0  }
   0x5   :  { %s1435_s27 = smov 0   ;;  %s1437_s28 = smov 0  }
   0x6 LB: > { %s980_s29 = sadd.s32 4294967295, %s1376_s28   ;;  %s981_s30 = sadd.s32 4294967294, %s1376_s28   ;;  %s1376_s28 = sphi %s1437_s28, %s20_s28   ;;  %s1372_s27 = sphi %s1435_s27, %s1736_s27   ;;  %s1368_s26 = sphi %s1433_s26, %s1735_s26   ;;  %s1364_s25 = sphi %s1431_s25, %s1734_s25   ;;  %s1360_s24 = sphi %s1429_s24, %s1733_s24   ;;  %s1356_s23 = sphi %s1427_s23, %s1732_s23   ;;  %s1352_s22 = sphi %s1425_s22, %s1731_s22   ;;  %s1348_s21 = sphi %s1423_s21, %s1730_s21  }
   0x7   : > { %s29_s7 = sadd.s32 1, %s1368_s26  ;;  %s32_s8 = sadd.s32 1, %s1372_s27 }
   0x8   : > { %p30_p0 = scmp.ge.s32.totalorder %s29_s7, 3  ;;  %s175_s9 = sadd.s32 1, %s1356_s23 }
   0x9   : > { %p185_p1 = scmp.ne.s32.totalorder %s1356_s23, %s1352_s22  ;;  %p186_p2 = scmp.eq.s32.totalorder %s980_s29, 5 }
   0xa   : > { %s1738_s7 = smov (%p30_p0, %s29_s7), 0  ;;  %s1740_s8 = smov (!%p30_p0, %s32_s8), %s1372_s27 }
   0xb   : > { %p1473_p3 = por %p186_p2, %p185_p1  ;;  %p191_p4 = scmp.ne.s32.totalorder %s1352_s22, %s1348_s21 }
   0xc   : > { %p34_p5 = scmp.ge.s32.totalorder %s1740_s8, 2  ;;  %p192_p6 = scmp.eq.s32.totalorder %s981_s30, 5 }
   0xd   : > { %s1718_s10 = scalar_select %p1473_p3, 1, 0 }
   0xe   : > { %p982_p7 = scmp.ge.s32.totalorder %s1376_s28, 1  ;;  %p199_p8 = scmp.lt.s32.totalorder %s1376_s28, 7 }
   0xf   : > { %s1742_s8 = smov (%p34_p5, %s1740_s8), 0  ;;  %p1483_p9 = por %p192_p6, %p191_p4 }
  0x10   : > { %1719 = sst [smem:[#allocation9_spill]] %s1742_s8  ;;  %p1487_p10 = pnand %p982_p7, %p199_p8 }
  0x11   : > { %s1720_s11 = scalar_select %p1483_p9, 1, 0 }
  0x12   : > { %s1721_s12 = scalar_select %p1487_p10, 1, 0 }
  0x13   : > { %s172_s13 = ssub.s32 %s1372_s27, %s1742_s8  ;;  %p1136_p12 = pneg %p1487_p10 }
  0x14   : > { %p173_p11 = scmp.eq.s32.totalorder %s172_s13, 0  ;;  %p1495_p13 = scmp.eq.s32.totalorder %s980_s29, 0 }
  0x15   : > { %s1378_s16 = smov [#allocation3]   ;;  %s1250_s30 = scalar_lea.hbm %s1709_s4, 1024 }
  0x16   : > { %s1722_s14 = scalar_select %p1495_p13, 1, 0 }
  0x17   : > { %s1500_s15 = scalar_select %p173_p11, %s1356_s23, %s175_s9  }
  0x18   : > { %s217_s17 = sshll.u32 %s1378_s16, 4  ;;  %p1504_p0 = pnand %p1495_p13, %p1136_p12  ;;  %s218_s17 = int_to_ptr.vmem [resolvable:$true] %s217_s17 }
  0x19   : > { %p1251_p1 = scmp.ne.s32.totalorder %s1709_s4, %s1250_s30  ;;  %p1257_p6 = scmp.lt.u32.totalorder %s1250_s30, %s1709_s4 }
  0x1a   : > { %p1252_p2 = pneg %p1504_p0 }
  0x1c   : > { %p1253_p4 = pnand %p1252_p2, %p1251_p1 }
  0x1e   : > { %p1254_p5 = pneg %p1253_p4 }
  0x20   : > { %p1259_p7 = pnand %p1257_p6, %p1254_p5 }
  0x22   : > { %1262 = shalt.err (!%p1259_p7)
}
  0x23   : > { %s1263_s8 = scalar_lea.vmem %s218_s17, 1024  ;;  %p1271_p9 = scmp.lt.s32.totalorder %s218_s17, %s218_s17 }
  0x24   : > { %p1264_p8 = scmp.ne.s32.totalorder %s218_s17, %s1263_s8  ;;  %p1272_p3 = scmp.lt.s32.totalorder %s1263_s8, %s1263_s8 }
  0x26   : > { %p1266_p11 = pnand %p1264_p8, %p1252_p2  ;;  %p1273_p13 = por %p1272_p3, %p1271_p9 }
  0x28   : > { %p1267_p12 = pneg %p1266_p11 }
  0x2a   : > { %p1274_p10 = pnand %p1273_p13, %p1267_p12 }
  0x2c   : > { %1277 = shalt.err (!%p1274_p10)
}
  0x2d   : > { %s1379_s19 = smov 64   ;;  %s1380_s20 = smov 4  }
  0x2e   : > { %1139 = dma.hbm_to_vmem [thread:$0]  (!%p1504_p0), %s1709_s4, 1024, %s218_s17, [#allocation4], %s1379_s19, %s1379_s19, %s1380_s20  }
  0x2f   : > { %p1724_p1 = scmp.ne.s32.totalorder %s1721_s12, 0 }
  0x30   : > { %p1725_p4 = scmp.ne.s32.totalorder (!%p1724_p1), %s1722_s14, 0 }
  0x31   : > { %255 = sbr.rel (%p1724_p1) target bundleno = 1250 (0x4e2), region = 44 }
  0x38   : > { %1339 = dma.done.wait (%p1725_p4), [#allocation4], 1024  }
  0x39   : > { %1341 = vsyncadd (%p1725_p4), [#allocation4], 4294966272  ;;  %s1717_s8 = sand.u32 1, %s1352_s22   ;;  %s988_s30 = sshll.u32 %s1364_s25, 3 }
  0x3a   : > { %s1534_s18 = sshll.u32 %s1717_s8, 3  ;;  %p292_p3 = scmp.lt.s32.totalorder %s988_s30, 15 }
  0x3b   : > { %s991_s17 = sshll.u32 %s1360_s24, 4  ;;  %s290_s8 = scalar_lea.vmem [#allocation6], %s1534_s18 }
  0x3c   : > { %s1744_s30 = smov (!%p292_p3, %s988_s30), 15  ;;  %p299_p9 = scmp.lt.s32.totalorder %s991_s17, 47 }
  0x3d   : > { %s1042_s12 = sshll.u32 %s1744_s30, 4  ;;  %p993_p10 = scmp.ne.s32.totalorder %s1360_s24, 0 }
  0x3e   : > { %s1540_s14 = scalar_lea.vmem %s1705_s0, %s1042_s12  ;;  %s1746_s17 = smov (!%p299_p9, %s991_s17), 47  ;;  %v1381_v0 = vmov (!%p993_p10), 0.0  }
  0x3f   : > { %s992_s19 = sshll.u32 %s1746_s17, 2  ;;  %308 = sbr.rel (%p993_p10) target bundleno = 70 (0x46), region = 52  ;;  %309 = vst [vmem:[#allocation2] sm:$0xff] (!%p993_p10), %v1381_v0 }
  0x40   : > { %s1545_s13 = scalar_lea.vmem %s1706_s1, %s992_s19 }
  0x46 PF: > { %v312_v1 = vld [vmem:[%s1540_s14 + $0x10] sm:$0xff]  ;;  %v310_v2 = vld [vmem:[%s1540_s14] sm:$0xff]  ;;  %v1382_v3 = vmov 0   ;;  %v313_v4 = vld [vmem:[%s1540_s14 + $0x18] sm:$0xff]  ;;  %v1383_v6 = vmov 0.0   ;;  %vm1384_vm0 = vmmov 0   ;;  %v327_v27 = vlaneseq }
  0x47   : > { %1221 = vset.pattern.permute.xlu1 %v1382_v3  ;;  %1220 = vset.pattern.permute.xlu0 %v1382_v3  ;;  %v311_v5 = vld [vmem:[%s1540_s14 + $0x8] sm:$0xff]  ;;  %v314_v8 = vld [vmem:[%s1540_s14 + $0x20] sm:$0xff]  ;;  %v317_v9 = vld [vmem:[%s1540_s14 + $0x38] sm:$0xff]  ;;  %s994_s30 = sshll.u32 %s1360_s24, 7  ;;  %p1019_p13 = scmp.ne.s32.totalorder %s1360_s24, 2 }
  0x48   : > { %338 = vperm.xlu1 %1221, %v312_v1   ;;  %332 = vperm.xlu0 %1220, %v310_v2   ;;  %v315_v7 = vld [vmem:[%s1540_s14 + $0x28] sm:$0xff]  ;;  %v316_v10 = vld [vmem:[%s1540_s14 + $0x30] sm:$0xff]  ;;  %v318_v12 = vld [vmem:[%s1540_s14 + $0x40] sm:$0xff]  ;;  %v328_v28 = vand.u32 127, %v327_v27  ;;  %v329_v29 = vstv %s994_s30 }
  0x49   : > { %1070 = vmatprep.subr.bf16.mxu0 %v1383_v6  ;;  %v319_v11 = vld [vmem:[%s1540_s14 + $0x48] sm:$0xff]  ;;  %v321_v13 = vld [vmem:[%s1540_s14 + $0x58] sm:$0xff]  ;;  %v320_v14 = vld [vmem:[%s1540_s14 + $0x50] sm:$0xff]  ;;  %1086 = vmatprep.mubr.msk.bf16.mxu0 %vm1384_vm0, %v1383_v6 }
  0x4a   : > { %v1222_v15 = vld [vmem:[%s1545_s13] sm:$0xff]   ;;  %v323_v16 = vld [vmem:[%s1540_s14 + $0x68] sm:$0xff]  ;;  %v325_v19 = vld [vmem:[%s1540_s14 + $0x78] sm:$0xff]  ;;  %v1583_v32 = vadd.s32 %v329_v29, %v328_v28 }
  0x4b   : > { %v322_v17 = vld [vmem:[%s1540_s14 + $0x60] sm:$0xff]  ;;  %1071 = vmatpush3.bf16.msra.mxu0 %v1222_v15  ;;  %v1223_v18 = vld [vmem:[%s1545_s13 + $0x8] sm:$0xff]   ;;  %v324_v20 = vld [vmem:[%s1540_s14 + $0x70] sm:$0xff] }
  0x4c   : > { %341 = vperm.xlu1 %1221, %v313_v4   ;;  %335 = vperm.xlu0 %1220, %v311_v5   ;;  %v1224_v21 = vld [vmem:[%s1545_s13 + $0x10] sm:$0xff]   ;;  %v1225_v22 = vld [vmem:[%s1545_s13 + $0x18] sm:$0xff]   ;;  %v1226_v23 = vld [vmem:[%s1545_s13 + $0x20] sm:$0xff]  }
  0x4d   : > { %1072 = vmatprep.subr.bf16.mxu0 %v1383_v6  ;;  %v1227_v24 = vld [vmem:[%s1545_s13 + $0x28] sm:$0xff]   ;;  %v1228_v25 = vld [vmem:[%s1545_s13 + $0x30] sm:$0xff]   ;;  %v1229_v26 = vld [vmem:[%s1545_s13 + $0x38] sm:$0xff]  }
  0x4f   : > { %1073 = vmatpush3.bf16.msra.mxu0 %v1223_v18 }
  0x50   : > { %347 = vperm.xlu1 %1221, %v315_v7   ;;  %344 = vperm.xlu0 %1220, %v314_v8  }
  0x51   : > { %1074 = vmatprep.subr.bf16.mxu0 %v1383_v6 }
  0x53   : > { %1075 = vmatpush3.bf16.msra.mxu0 %v1224_v21 }
  0x54   : > { %353 = vperm.xlu1 %1221, %v317_v9   ;;  %350 = vperm.xlu0 %1220, %v316_v10  }
  0x55   : > { %1076 = vmatprep.subr.bf16.mxu0 %v1383_v6 }
  0x57   : > { %1077 = vmatpush3.bf16.msra.mxu0 %v1225_v22 }
  0x58   : > { %359 = vperm.xlu1 %1221, %v319_v11   ;;  %356 = vperm.xlu0 %1220, %v318_v12  }
  0x59   : > { %1078 = vmatprep.subr.bf16.mxu0 %v1383_v6 }
  0x5b   : > { %1079 = vmatpush3.bf16.msra.mxu0 %v1226_v23 }
  0x5c   : > { %365 = vperm.xlu1 %1221, %v321_v13   ;;  %362 = vperm.xlu0 %1220, %v320_v14  }
  0x5d   : > { %1080 = vmatprep.subr.bf16.mxu0 %v1383_v6 }
  0x5f   : > { %1081 = vmatpush3.bf16.msra.mxu0 %v1227_v24 }
  0x60   : > { %371 = vperm.xlu1 %1221, %v323_v16   ;;  %368 = vperm.xlu0 %1220, %v322_v17  }
  0x61   : > { %1082 = vmatprep.subr.bf16.mxu0 %v1383_v6 }
  0x63   : > { %1083 = vmatpush3.bf16.msra.mxu0 %v1228_v25 }
  0x64   : > { %377 = vperm.xlu1 %1221, %v325_v19   ;;  %374 = vperm.xlu0 %1220, %v324_v20  }
  0x65   : > { %1084 = vmatprep.subr.bf16.mxu0 %v1383_v6 }
  0x67   : > { %1085 = vmatpush3.bf16.msra.mxu0 %v1229_v26 }
  0xc7   : > { %v339_v30 = vpop.permute.xlu1 %338  ;;  %v333_v31 = vpop.permute.xlu0 %332 }
  0xc8   : > { %vm381_vm1 = vcmp.eq.s32.totalorder %v339_v30, %v1583_v32  ;;  %vm379_vm2 = vcmp.eq.s32.totalorder %v333_v31, %v1583_v32 }
  0xc9   : > { %v997_v37 = vsel %vm381_vm1, 1.0, %v1383_v6  ;;  %v995_v38 = vsel %vm379_vm2, 1.0, %v1383_v6  ;;  %vm524_vm1 = vcmask 1041409   ;;  %vm526_vm2 = vcmask 1042434  }
  0xcb   : > { %v342_v33 = vpop.permute.xlu1 %341  ;;  %v336_v34 = vpop.permute.xlu0 %335 }
  0xcc   : > { %vm382_vm3 = vcmp.eq.s32.totalorder %v342_v33, %v1583_v32  ;;  %vm380_vm4 = vcmp.eq.s32.totalorder %v336_v34, %v1583_v32 }
  0xcd   : > { %v998_v35 = vsel %vm382_vm3, 1.0, %v1383_v6  ;;  %v996_v36 = vsel %vm380_vm4, 1.0, %v1383_v6  ;;  %vm528_vm3 = vcmask 1043459   ;;  %vm530_vm4 = vcmask 1044484  }
  0xce   : > { %v434_v41 = vadd.f32 %v998_v35, %v997_v37  ;;  %v427_v42 = vadd.f32 %v996_v36, %v995_v38 }
  0xcf   : > { %v348_v39 = vpop.permute.xlu1 %347  ;;  %v345_v40 = vpop.permute.xlu0 %344 }
  0xd0   : > { %vm384_vm5 = vcmp.eq.s32.totalorder %v348_v39, %v1583_v32  ;;  %vm383_vm6 = vcmp.eq.s32.totalorder %v345_v40, %v1583_v32  ;;  %v435_v48 = vrot.slane %v434_v41, 4  ;;  %v428_v49 = vrot.slane %v427_v42, 4 }
  0xd1   : > { %v1000_v43 = vsel %vm384_vm5, 1.0, %v1383_v6  ;;  %v999_v44 = vsel %vm383_vm6, 1.0, %v1383_v6  ;;  %vm532_vm5 = vcmask 1045509   ;;  %vm534_vm6 = vcmask 1046534  }
  0xd2   : > { %v441_v45 = vadd.f32 %v1000_v43, %v999_v44  ;;  %v436_v56 = vadd.f32 %v435_v48, %v434_v41  ;;  %v429_v57 = vadd.f32 %v428_v49, %v427_v42 }
  0xd3   : > { %v354_v46 = vpop.permute.xlu1 %353  ;;  %v351_v47 = vpop.permute.xlu0 %350 }
  0xd4   : > { %vm386_vm7 = vcmp.eq.s32.totalorder %v354_v46, %v1583_v32  ;;  %v442_v50 = vrot.slane %v441_v45, 4  ;;  %vm385_vm8 = vcmp.eq.s32.totalorder %v351_v47, %v1583_v32  ;;  %v437_v2 = vrot.slane %v436_v56, 2 }
  0xd5   : > { %v1002_v51 = vsel %vm386_vm7, 1.0, %v1383_v6  ;;  %v1001_v52 = vsel %vm385_vm8, 1.0, %v1383_v6  ;;  %v430_v3 = vrot.slane %v429_v57, 2  ;;  %vm536_vm7 = vcmask 1047559  }
  0xd6   : > { %v448_v53 = vadd.f32 %v1002_v51, %v1001_v52  ;;  %v443_v58 = vadd.f32 %v442_v50, %v441_v45  ;;  %v438_v14 = vadd.f32 %v437_v2, %v436_v56  ;;  %vm1386_vm8 = vmmov (!%p1019_p13), 0  }
  0xd7   : > { %v360_v54 = vpop.permute.xlu1 %359  ;;  %v357_v55 = vpop.permute.xlu0 %356  ;;  %v431_v15 = vadd.f32 %v430_v3, %v429_v57 }
  0xd8   : > { %vm388_vm9 = vcmp.eq.s32.totalorder %v360_v54, %v1583_v32  ;;  %v449_v59 = vrot.slane %v448_v53, 4  ;;  %vm387_vm10 = vcmp.eq.s32.totalorder %v357_v55, %v1583_v32  ;;  %v444_v4 = vrot.slane %v443_v58, 2 }
  0xd9   : > { %v1004_v60 = vsel %vm388_vm9, 1.0, %v1383_v6  ;;  %v1003_v61 = vsel %vm387_vm10, 1.0, %v1383_v6  ;;  %v439_v27 = vrot.slane %v438_v14, 1  ;;  %v432_v28 = vrot.slane %v431_v15, 1 }
  0xda   : > { %v450_v62 = vadd.f32 %v449_v59, %v448_v53  ;;  %v455_v63 = vadd.f32 %v1004_v60, %v1003_v61  ;;  %v445_v16 = vadd.f32 %v444_v4, %v443_v58 }
  0xdb   : > { %v366_v0 = vpop.permute.xlu1 %365  ;;  %v363_v1 = vpop.permute.xlu0 %362  ;;  %v440_v39 = vadd.f32 %v439_v27, %v438_v14  ;;  %v433_v40 = vadd.f32 %v432_v28, %v431_v15  ;;  %v1233_v27 = vld [vmem:[%s1707_s2 + $0x18] sm:$0xff] (!%p1019_p13)   ;;  %v1239_v28 = vld [vmem:[#allocation3 + $0x8] sm:$0xff] (!%p1019_p13)  }
  0xdc   : > { %vm390_vm11 = vcmp.eq.s32.totalorder %v366_v0, %v1583_v32  ;;  %v456_v5 = vrot.slane %v455_v63, 4  ;;  %vm389_vm12 = vcmp.eq.s32.totalorder %v363_v1, %v1583_v32  ;;  %v451_v8 = vrot.slane %v450_v62, 2 }
  0xdd   : > { %v1006_v7 = vsel %vm390_vm11, 1.0, %v1383_v6  ;;  %v1005_v9 = vsel %vm389_vm12, 1.0, %v1383_v6  ;;  %v446_v29 = vrot.slane %v445_v16, 1  ;;  %v485_v48 = vpack.c.bf16 %v440_v39, %v440_v39  ;;  %v1243_v39 = vld [vmem:[#allocation3 + $0x28] sm:$0xff] (!%p1019_p13)  }
  0xde   : > { %v457_v10 = vadd.f32 %v456_v5, %v455_v63  ;;  %v462_v11 = vadd.f32 %v1006_v7, %v1005_v9  ;;  %v452_v20 = vadd.f32 %v451_v8, %v450_v62  ;;  %v484_v49 = vpack.c.bf16 %v433_v40, %v433_v40 }
  0xdf   : > { %v372_v12 = vpop.permute.xlu1 %371  ;;  %v369_v13 = vpop.permute.xlu0 %368  ;;  %v447_v42 = vadd.f32 %v446_v29, %v445_v16  ;;  %v517_v57 = vunpack.c.l.b16 %v485_v48  ;;  %v483_v16 = vld [vmem:[#allocation2] sm:$0xff] }
  0xe0   : > { %vm392_vm13 = vcmp.eq.s32.totalorder %v372_v12, %v1583_v32  ;;  %vm391_vm14 = vcmp.eq.s32.totalorder %v369_v13, %v1583_v32  ;;  %v458_v17 = vrot.slane %v457_v10, 2  ;;  %v463_v18 = vrot.slane %v462_v11, 4  ;;  %v1234_v29 = vld [vmem:[%s1707_s2 + $0x20] sm:$0xff] (!%p1019_p13)  }
  0xe1   : > { %v1008_v19 = vsel %vm392_vm13, 1.0, %v1383_v6  ;;  %v1007_v21 = vsel %vm391_vm14, 1.0, %v1383_v6  ;;  %v453_v33 = vrot.slane %v452_v20, 1  ;;  %v486_v52 = vpack.c.bf16 %v447_v42, %v447_v42  ;;  %v1245_v42 = vld [vmem:[#allocation3 + $0x38] sm:$0xff] (!%p1019_p13)  }
  0xe2   : > { %v459_v22 = vadd.f32 %v458_v17, %v457_v10  ;;  %v464_v23 = vadd.f32 %v463_v18, %v462_v11  ;;  %v469_v24 = vadd.f32 %v1008_v19, %v1007_v21  ;;  %v516_v58 = vunpack.c.l.b16 %v484_v49 }
  0xe3   : > { %v378_v25 = vpop.permute.xlu1 %377  ;;  %v375_v26 = vpop.permute.xlu0 %374  ;;  %v454_v45 = vadd.f32 %v453_v33, %v452_v20  ;;  %v518_v61 = vunpack.c.l.b16 %v486_v52  ;;  %v1241_v33 = vld [vmem:[#allocation3 + $0x18] sm:$0xff] (!%p1019_p13)  }
  0xe4   : > { %vm394_vm15 = vcmp.eq.s32.totalorder %v378_v25, %v1583_v32  ;;  %vm393_vm0 = vcmp.eq.s32.totalorder %v375_v26, %v1583_v32  ;;  %v465_v30 = vrot.slane %v464_v23, 2  ;;  %v470_v31 = vrot.slane %v469_v24, 4  ;;  %v1232_v25 = vld [vmem:[%s1707_s2 + $0x10] sm:$0xff] (!%p1019_p13)   ;;  %v1238_v26 = vld [vmem:[#allocation3] sm:$0xff] (!%p1019_p13)  }
  0xe5   : > { %v1010_v34 = vsel %vm394_vm15, 1.0, %v1383_v6  ;;  %v1009_v35 = vsel %vm393_vm0, 1.0, %v1383_v6  ;;  %v460_v36 = vrot.slane %v459_v22, 1  ;;  %v487_v6 = vpack.c.bf16 %v454_v45, %v454_v45 }
  0xe6   : > { %v466_v37 = vadd.f32 %v465_v30, %v464_v23  ;;  %v471_v38 = vadd.f32 %v470_v31, %v469_v24  ;;  %v476_v41 = vadd.f32 %v1010_v34, %v1009_v35  ;;  %v525_v2 = vsel %vm524_vm1, %v517_v57, %v516_v58  ;;  %v1231_v24 = vld [vmem:[%s1707_s2 + $0x8] sm:$0xff] (!%p1019_p13)   ;;  %v1240_v30 = vld [vmem:[#allocation3 + $0x10] sm:$0xff] (!%p1019_p13)   ;;  %v1236_v34 = vld [vmem:[%s1707_s2 + $0x30] sm:$0xff] (!%p1019_p13)  }
  0xe7   : > { %v461_v32 = vadd.f32 %v460_v36, %v459_v22  ;;  %v519_v63 = vunpack.c.l.b16 %v487_v6  ;;  %v527_v5 = vsel %vm526_vm2, %v518_v61, %v525_v2  ;;  %v1230_v22 = vld [vmem:[%s1707_s2] sm:$0xff] (!%p1019_p13)   ;;  %v1385_v23 = vmov (!%p1019_p13), 0.0   ;;  %v1235_v31 = vld [vmem:[%s1707_s2 + $0x28] sm:$0xff] (!%p1019_p13)  }
  0xe8   : > { %v467_v43 = vrot.slane %v466_v37, 1  ;;  %v472_v44 = vrot.slane %v471_v38, 2  ;;  %v477_v46 = vrot.slane %v476_v41, 4  ;;  %1090 = vmatprep.subr.bf16.mxu0 (!%p1019_p13), %v1385_v23  ;;  %1110 = vmatprep.subr.bf16.mxu1 (!%p1019_p13), %v1385_v23  ;;  %v1242_v36 = vld [vmem:[#allocation3 + $0x20] sm:$0xff] (!%p1019_p13)  }
  0xe9   : > { %v488_v55 = vpack.c.bf16 %v461_v32, %v461_v32  ;;  %v529_v9 = vsel %vm528_vm3, %v519_v63, %v527_v5  ;;  %1126 = vmatprep.mubr.msk.bf16.mxu1 (!%p1019_p13), %vm1386_vm8, %v1385_v23  ;;  %1111 = vmatpush3.bf16.msra.mxu1 (!%p1019_p13), %v1238_v26 }
  0xea   : > { %v473_v47 = vadd.f32 %v472_v44, %v471_v38  ;;  %v468_v50 = vadd.f32 %v467_v43, %v466_v37  ;;  %v478_v51 = vadd.f32 %v477_v46, %v476_v41  ;;  %1112 = vmatprep.subr.bf16.mxu1 (!%p1019_p13), %v1385_v23  ;;  %v1237_v38 = vld [vmem:[%s1707_s2 + $0x38] sm:$0xff] (!%p1019_p13)   ;;  %v1020_v43 = vld [vmem:[%s1708_s3] ss:$0 sm:$0xff] (!%p1019_p13) }
  0xeb   : > { %v520_v1 = vunpack.c.l.b16 %v488_v55  ;;  %v1244_v41 = vld [vmem:[#allocation3 + $0x30] sm:$0xff] (!%p1019_p13)  }
  0xec   : > { %v474_v53 = vrot.slane %v473_v47, 1  ;;  %v479_v54 = vrot.slane %v478_v51, 2  ;;  %v489_v59 = vpack.c.bf16 %v468_v50, %v468_v50  ;;  %v1029_v50 = vld [vmem:[%s1710_s5] ss:$0 sm:$0xff] (!%p1019_p13) }
  0xed   : > { %v531_v10 = vsel %vm530_vm4, %v520_v1, %v529_v9  ;;  %1113 = vmatpush3.bf16.msra.mxu1 (!%p1019_p13), %v1239_v28 }
  0xee   : > { %v475_v56 = vadd.f32 %v474_v53, %v473_v47  ;;  %v480_v60 = vadd.f32 %v479_v54, %v478_v51  ;;  %v521_v3 = vunpack.c.l.b16 %v489_v59  ;;  %1114 = vmatprep.subr.bf16.mxu1 (!%p1019_p13), %v1385_v23 }
  0xf0   : > { %v490_v62 = vpack.c.bf16 %v475_v56, %v475_v56  ;;  %v481_v0 = vrot.slane %v480_v60, 1  ;;  %v533_v12 = vsel %vm532_vm5, %v521_v3, %v531_v10 }
  0xf1   : > { %1115 = vmatpush3.bf16.msra.mxu1 (!%p1019_p13), %v1240_v30 }
  0xf2   : > { %v482_v4 = vadd.f32 %v481_v0, %v480_v60  ;;  %v522_v7 = vunpack.c.l.b16 %v490_v62  ;;  %1116 = vmatprep.subr.bf16.mxu1 (!%p1019_p13), %v1385_v23 }
  0xf4   : > { %v491_v8 = vpack.c.bf16 %v482_v4, %v482_v4  ;;  %v535_v13 = vsel %vm534_vm6, %v522_v7, %v533_v12 }
  0xf5   : > { %1117 = vmatpush3.bf16.msra.mxu1 (!%p1019_p13), %v1241_v33 }
  0xf6   : > { %v523_v11 = vunpack.c.l.b16 %v491_v8  ;;  %1118 = vmatprep.subr.bf16.mxu1 (!%p1019_p13), %v1385_v23 }
  0xf8   : > { %v537_v14 = vsel %vm536_vm7, %v523_v11, %v535_v13 }
  0xf9   : > { %v538_v15 = vpack.c.b16 %v537_v14, %v537_v14  ;;  %1119 = vmatpush3.bf16.msra.mxu1 (!%p1019_p13), %v1242_v36 }
  0xfa   : > { %1120 = vmatprep.subr.bf16.mxu1 (!%p1019_p13), %v1385_v23 }
  0xfb   : > { %1087 = vmatmul.mubr.bf16.vlgmr.msra.gmra.mrb[0].mxu0 %v538_v15 }
  0xfc   : > { %1091 = vmatpush3.bf16.msra.mxu0 (!%p1019_p13), %v1230_v22  ;;  %1106 = vmatprep.mubr.msk.bf16.mxu0 (!%p1019_p13), %vm1386_vm8, %v1385_v23 }
  0xfd   : > { %1092 = vmatprep.subr.bf16.mxu0 (!%p1019_p13), %v1385_v23  ;;  %1121 = vmatpush3.bf16.msra.mxu1 (!%p1019_p13), %v1243_v39 }
  0xfe   : > { %1122 = vmatprep.subr.bf16.mxu1 (!%p1019_p13), %v1385_v23 }
 0x100   : > { %1093 = vmatpush3.bf16.msra.mxu0 (!%p1019_p13), %v1231_v24 }
 0x101   : > { %1094 = vmatprep.subr.bf16.mxu0 (!%p1019_p13), %v1385_v23  ;;  %1123 = vmatpush3.bf16.msra.mxu1 (!%p1019_p13), %v1244_v41 }
 0x102   : > { %1124 = vmatprep.subr.bf16.mxu1 (!%p1019_p13), %v1385_v23 }
 0x104   : > { %1095 = vmatpush3.bf16.msra.mxu0 (!%p1019_p13), %v1232_v25 }
 0x105   : > { %1096 = vmatprep.subr.bf16.mxu0 (!%p1019_p13), %v1385_v23  ;;  %1125 = vmatpush3.bf16.msra.mxu1 (!%p1019_p13), %v1245_v42 }
 0x108   : > { %1097 = vmatpush3.bf16.msra.mxu0 (!%p1019_p13), %v1233_v27 }
 0x109   : > { %1098 = vmatprep.subr.bf16.mxu0 (!%p1019_p13), %v1385_v23 }
 0x10c   : > { %1099 = vmatpush3.bf16.msra.mxu0 (!%p1019_p13), %v1234_v29 }
 0x10d   : > { %1100 = vmatprep.subr.bf16.mxu0 (!%p1019_p13), %v1385_v23 }
 0x110   : > { %1101 = vmatpush3.bf16.msra.mxu0 (!%p1019_p13), %v1235_v31 }
 0x111   : > { %1102 = vmatprep.subr.bf16.mxu0 (!%p1019_p13), %v1385_v23 }
 0x114   : > { %1103 = vmatpush3.bf16.msra.mxu0 (!%p1019_p13), %v1236_v34 }
 0x115   : > { %1104 = vmatprep.subr.bf16.mxu0 (!%p1019_p13), %v1385_v23 }
 0x118   : > { %1105 = vmatpush3.bf16.msra.mxu0 (!%p1019_p13), %v1237_v38 }
 0x1cb   : > { %633 = sbr.rel (%p1019_p13) target bundleno = 1224 (0x4c8), region = 56 }
 0x1ce   : > { %v622_v17 = vpop.f32.mrb[0].mxu0 }
 0x1cf   : > { %v628_v18 = vadd.f32 %v622_v17, %v483_v16  ;;  %v1088_v19 = vpop.f32.mrb[1].mxu0 }
 0x1d0   : > { %v625_v20 = vpop.f32.mrb[2].mxu0 }
 0x1d1   : > { %629 = vst [vmem:[#allocation2] sm:$0xff] %v628_v18  ;;  %v1089_v21 = vpop.f32.mrb[3].mxu0 }
 0x1d8   : > { %v634_v35 = vld [vmem:[#allocation2] sm:$0xff] }
 0x1d9   : > { %v635_v37 = vmul.f32 0.0625, %v634_v35 }
 0x1db   : > { %v636_v40 = vpack.c.bf16 %v635_v37, %v635_v37 }
 0x1dd   : > { %1107 = vmatmul.mubr.bf16.vlgmr.msra.gmra.mrb[0].mxu0 %v636_v40 }
 0x2b0   : > { %v742_v44 = vpop.f32.mrb[0].mxu0 }
 0x2b1   : > { %v743_v45 = vadd.f32 %v1020_v43, %v742_v44  ;;  %v1108_v46 = vpop.f32.mrb[1].mxu0 }
 0x2b2   : > { %v745_v32 = vpop.f32.mrb[2].mxu0 }
 0x2b3   : > { %v748_v47 = vmax.f32 %v743_v45, 0.0  ;;  %v1109_v48 = vpop.f32.mrb[3].mxu0 }
 0x2b5   : > { %v749_v49 = vpack.c.bf16 %v748_v47, %v748_v47 }
 0x2b7   : > { %1127 = vmatmul.mubr.bf16.vlgmr.msra.gmra.mrb[0].mxu1 %v749_v49 }
 0x38a   : > { %v855_v51 = vpop.f32.mrb[0].mxu1 }
 0x38b   : > { %v856_v52 = vadd.f32 %v1029_v50, %v855_v51  ;;  %v1128_v53 = vpop.f32.mrb[1].mxu1 }
 0x38c   : > { %v858_v6 = vpop.f32.mrb[2].mxu1 }
 0x38d   : > { %861 = vmax.xlane.f32.xlu0 %v856_v52  ;;  %v1129_v54 = vpop.f32.mrb[3].mxu1 }
 0x41a   : > { %v862_v55 = vpop.xlane.xlu0 %861 }
 0x41b   : > { %v863_v56 = vsub.f32 %v856_v52, %v862_v55 }
 0x41d   : > { %v864_v57 = vmul.f32 1.442695, %v863_v56 }
 0x41f   : > { %1246 = vpow2.f32 %v864_v57 }
 0x429   : > { %v1247_v58 = vpop.eup %1246 }
 0x42a   : > { %866 = vadd.xlane.f32.xlu0 %v1247_v58 }
 0x4b7   : > { %v867_v59 = vpop.xlane.xlu0 %866 }
 0x4b8   : > { %1248 = vlog2.f32 %v867_v59 }
 0x4c2   : > { %v1249_v60 = vpop.eup %1248 }
 0x4c3   : > { %v869_v61 = vmul.f32 0.6931472, %v1249_v60 }
 0x4c5   : > { %v870_v62 = vsub.f32 %v863_v56, %v869_v61 }
 0x4c7   : > { %871 = vst [vmem:[%s290_s8] sm:$0xff] %v870_v62 }
 0x4c8 PF: > { %s1039_s13 = sshll.u32 %s1364_s25, 7  ;;  %s886_s9 = sshll.u32 %s290_s8, 4  ;;  %s887_s9 = int_to_ptr.vmem [resolvable:$true] %s886_s9 }
 0x4c9   : > { %s1654_s12 = scalar_lea.hbm %s1711_s6, %s1039_s13  ;;  %s1726_s16 = sand.u32 1, %s1352_s22  }
 0x4ca   : > { %s873_s14 = scalar_lea.sflag [#allocation5], %s1726_s16  ;;  %s1278_s24 = scalar_lea.vmem %s887_s9, 128 }
 0x4cb   : > { %p1279_p0 = scmp.ne.s32.totalorder %s887_s9, %s1278_s24  ;;  %p1727_p2 = scmp.ne.s32.totalorder %s1718_s10, 0 }
 0x4cc   : > { %s1387_s19 = smov [#allocation6]  }
 0x4cd   : > { %p1280_p5 = pnand %p1279_p0, %p1727_p2  ;;  %s1282_s20 = sshll.u32 %s1387_s19, 4  ;;  %s1283_s20 = int_to_ptr.vmem [resolvable:$false] %s1282_s20 }
 0x4ce   : > { %s1284_s29 = scalar_lea.vmem %s1283_s20, 256  ;;  %p1285_p7 = scmp.lt.s32.totalorder %s887_s9, %s1283_s20 }
 0x4cf   : > { %p1281_p6 = pneg %p1280_p5  ;;  %p1286_p8 = scmp.lt.s32.totalorder %s1284_s29, %s1278_s24 }
 0x4d1   : > { %p1287_p11 = por %p1286_p8, %p1285_p7 }
 0x4d3   : > { %p1288_p12 = pnand %p1287_p11, %p1281_p6 }
 0x4d5   : > { %1291 = shalt.err (!%p1288_p12)
}
 0x4d6   : > { %s1292_s25 = scalar_lea.hbm %s1654_s12, 128  ;;  %s1296_s13 = scalar_lea.hbm %s1711_s6, 256 }
 0x4d7   : > { %p1293_p1 = scmp.ne.s32.totalorder %s1654_s12, %s1292_s25  ;;  %p1297_p9 = scmp.lt.u32.totalorder %s1654_s12, %s1711_s6 }
 0x4d8   : > { %p1298_p10 = scmp.lt.u32.totalorder %s1296_s13, %s1292_s25  ;;  %p1300_p0 = scmp.lt.u32.totalorder %s1292_s25, %s1654_s12 }
 0x4d9   : > { %p1294_p4 = pnand %p1293_p1, %p1727_p2 }
 0x4da   : > { %p1299_p13 = por %p1298_p10, %p1297_p9 }
 0x4db   : > { %p1295_p3 = pneg %p1294_p4 }
 0x4dc   : > { %p1301_p5 = por %p1300_p0, %p1299_p13 }
 0x4de   : > { %p1302_p6 = pnand %p1301_p5, %p1295_p3 }
 0x4e0   : > { %1305 = shalt.err (!%p1302_p6)
}
 0x4e1   : > { %1134 = dma.vmem_to_hbm [thread:$0]  (%p1727_p2), %s887_s9, 128, %s1654_s12, %s873_s14  }
 0x4e2 PF: > { %p1146_p7 = scmp.ge.s32.totalorder %s1376_s28, 2  ;;  %s898_s16 = sand.u32 1, %s1348_s21  }
 0x4e3   : > { %p1728_p8 = scmp.ne.s32.totalorder %s1720_s11, 0  ;;  %s899_s24 = scalar_lea.sflag [#allocation5], %s898_s16 }
 0x4e5   : > { %p1141_p11 = pnand %p1146_p7, %p1728_p8 }
 0x4e7   : > { %1343 = dma.done.wait (!%p1141_p11), %s899_s24, 128  }
 0x4e8   : > { %1345 = vsyncadd (!%p1141_p11), %s899_s24, 4294967168  ;;  %s20_s28 = sadd.s32 1, %s1376_s28   ;;  %s1729_s10 = sld [smem:[#allocation9_spill]] }
 0x4e9   : > { %p17_p12 = scmp.ge.s32.totalorder %s20_s28, 8   ;;  %s1730_s21 = smov %s1352_s22 }
 0x4ea   : > { %s1731_s22 = smov %s1356_s23  ;;  %s1732_s23 = smov %s1500_s15 }
 0x4eb   : > { %s1733_s24 = smov %s1368_s26  ;;  %s1734_s25 = smov %s1372_s27 }
 0x4ec   : > { %s1735_s26 = smov %s1738_s7  ;;  %19 = sbr.rel (!%p17_p12) target bundleno = 6 (0x6), region = 95 }
 0x4ee   : > { %s1736_s27 = smov %s1729_s10 }
 0x4f3   :  { %904 = vsyncpa [#allocation4], 1 }
 0x4f4   :  { %906 = vsyncpa [#allocation4 + $0x1], 1 }
 0x4f5   :  { %907 = vsyncpa [#allocation5], 1 }
 0x4f6   :  { %909 = vsyncpa [#allocation5 + $0x1], 1 }

</bundles_post_ra>
